<compile_context>
chip_gen: v7x
topology: tpu7x:2x2x1
jax: 0.10.0
libtpu: 0.0.40
codegen_flags: <defaults>
</compile_context>

<pallas_src>
import jax
import jax.numpy as jnp
from jax.experimental import pallas as pl
from jax.experimental.pallas import tpu as pltpu


# -----------------------------------------------------------------------------
# Helpers
# -----------------------------------------------------------------------------
def _round_up(x, m):
    return ((x + m - 1) // m) * m


# -----------------------------------------------------------------------------
# Fused Pallas kernel: T decode steps of (L x GRU cell -> fc_out), weights resident
# -----------------------------------------------------------------------------
def decoder_kernel(xemb_ref, h0_ref, wih_ref, whh_ref, ba_ref, bhn_ref,
                   fcw_ref, fcb_ref, pred_ref, hout_ref, h_sc):
    """One grid step == one decode step; weights/biases use constant block indices.

    xemb_ref: (1, Bp, Dp)    bf16  embedded token for this step (streamed per step)
    h0_ref  : (L, Bp, Hp)    f32   initial hidden (read once at t == 0)
    wih_ref : (L, Dp, 3*Hp)  bf16  per-layer W_ih^T, gate-blocked along lanes
    whh_ref : (L, Hp, 3*Hp)  bf16  per-layer W_hh^T, gate-blocked along lanes
    ba_ref  : (L, 1, 3*Hp)   f32   [b_ir+b_hr | b_iz+b_hz | b_in]
    bhn_ref : (L, 1, Hp)     f32   b_hn (n = tanh(i_n + r*(h_n + b_hn)), PyTorch GRU)
    fcw_ref : (Hp, Vp)       bf16  fc_out weight^T
    fcb_ref : (1, Vp)        f32   fc_out bias
    pred_ref: (1, Bp, Vp)    f32   logits for this step (streamed out per step)
    hout_ref: (L, Bp, Hp)    f32   final hidden (written once at t == T-1)
    h_sc    : (L, Bp, Hp)    f32   VMEM scratch carrying hidden across grid steps
    """
    L, Bp, Hp = h_sc.shape
    Dp = wih_ref.shape[1]
    wdt = whh_ref.dtype
    t = pl.program_id(0)

    @pl.when(t == 0)
    def _():
        h_sc[...] = h0_ref[...]

    x = xemb_ref[0]                                              # (Bp, Dp) bf16
    for l in range(L):
        h = h_sc[l]                                              # (Bp, Hp) f32
        k = Dp if l == 0 else Hp                                 # static per-layer K
        w_ih = wih_ref[l][0:k, :]                                # 128-row boundary slice
        gi = jnp.dot(x, w_ih, preferred_element_type=jnp.float32) + ba_ref[l]
        gh = jnp.dot(h.astype(wdt), whh_ref[l], preferred_element_type=jnp.float32)

        # gate slices land on 128-lane boundaries -> free views
        r = jax.nn.sigmoid(gi[:, 0:Hp] + gh[:, 0:Hp])
        z = jax.nn.sigmoid(gi[:, Hp:2 * Hp] + gh[:, Hp:2 * Hp])
        n = jnp.tanh(gi[:, 2 * Hp:3 * Hp] + r * (gh[:, 2 * Hp:3 * Hp] + bhn_ref[l]))
        h_new = (1.0 - z) * n + z * h

        h_sc[l] = h_new
        x = h_new.astype(wdt)                                    # next layer input (Bp, Hp)

    pred_ref[0] = (jnp.dot(x, fcw_ref[...], preferred_element_type=jnp.float32)
                   + fcb_ref[...])

    @pl.when(t == pl.num_programs(0) - 1)
    def _():
        hout_ref[...] = h_sc[...]


# -----------------------------------------------------------------------------
# One-time weight preparation (pre-transpose, gate-block pack, zero-pad, bf16)
# -----------------------------------------------------------------------------
def prepare_params(params, embed_size, hidden_size, output_size,
                   weight_dtype=jnp.bfloat16):
    H, E, V = hidden_size, embed_size, output_size
    Hp = _round_up(H, 128)
    Ep = _round_up(E, 128)
    Vp = _round_up(V, 128)
    Dp = max(Ep, Hp)                      # unified (padded) layer-0 input dim
    L = len(params["w_ih"])

    # Embedding table: rows stay un-padded (gather happens in the wrapper), columns
    # are lane-padded to Dp so the gathered rows feed the layer-0 matmul directly.
    emb = (jnp.zeros((V, Dp), jnp.float32)
           .at[:, :E].set(params["embedding"]).astype(weight_dtype))

    wih_l, whh_l, ba_l, bhn_l = [], [], [], []
    for l in range(L):
        w_ih = params["w_ih"][l]          # (3H, in_dim)
        w_hh = params["w_hh"][l]          # (3H, H)
        b_ih = params["b_ih"][l]          # (3H,)
        b_hh = params["b_hh"][l]          # (3H,)
        in_dim = w_ih.shape[1]

        wih = jnp.zeros((Dp, 3 * Hp), jnp.float32)
        whh = jnp.zeros((Hp, 3 * Hp), jnp.float32)
        for g in range(3):                # gate g -> lanes [g*Hp, g*Hp+H)
            wih = wih.at[:in_dim, g * Hp:g * Hp + H].set(w_ih[g * H:(g + 1) * H].T)
            whh = whh.at[:H, g * Hp:g * Hp + H].set(w_hh[g * H:(g + 1) * H].T)

        ba = jnp.zeros((3 * Hp,), jnp.float32)
        ba = ba.at[0 * Hp:0 * Hp + H].set(b_ih[0:H] + b_hh[0:H])          # r
        ba = ba.at[1 * Hp:1 * Hp + H].set(b_ih[H:2 * H] + b_hh[H:2 * H])  # z
        ba = ba.at[2 * Hp:2 * Hp + H].set(b_ih[2 * H:3 * H])              # i_n
        bhn = jnp.zeros((Hp,), jnp.float32).at[:H].set(b_hh[2 * H:3 * H])

        wih_l.append(wih.astype(weight_dtype))
        whh_l.append(whh.astype(weight_dtype))
        ba_l.append(ba.reshape(1, 3 * Hp))
        bhn_l.append(bhn.reshape(1, Hp))

    fcw = (jnp.zeros((Hp, Vp), jnp.float32)
           .at[:H, :V].set(params["fc_w"].T).astype(weight_dtype))
    fcb = jnp.zeros((1, Vp), jnp.float32).at[0, :V].set(params["fc_b"])

    return {
        "emb": emb,                       # (V, Dp)      bf16
        "wih": jnp.stack(wih_l),          # (L, Dp, 3Hp) bf16
        "whh": jnp.stack(whh_l),          # (L, Hp, 3Hp) bf16
        "ba": jnp.stack(ba_l),            # (L, 1, 3Hp)  f32
        "bhn": jnp.stack(bhn_l),          # (L, 1, Hp)   f32
        "fcw": fcw,                       # (Hp, Vp)     bf16
        "fcb": fcb,                       # (1, Vp)      f32
    }


# -----------------------------------------------------------------------------
# Forward wrappers: one fused pallas_call for a whole (teacher-forced) decode
# -----------------------------------------------------------------------------
def make_decoder(prepped, output_size, hidden_size):
    emb, wih, whh = prepped["emb"], prepped["wih"], prepped["whh"]
    ba, bhn, fcw, fcb = prepped["ba"], prepped["bhn"], prepped["fcw"], prepped["fcb"]
    L, Dp, _ = wih.shape
    Hp = whh.shape[1]
    Vp = fcb.shape[1]
    V, H = output_size, hidden_size

    @jax.jit
    def decode(ids, hidden):
        """ids: (B, T) int32 token ids; hidden: (L, B, H) f32.

        Returns (predictions (B, T, V), final hidden (L, B, H)); step t uses ids[:, t]
        exactly like T successive calls of the PyTorch module's forward.
        """
        B, T = ids.shape
        Bp = _round_up(max(B, 8), 8)

        # Embedding gather (dropout = identity at inference) done ONCE for all T steps.
        gathered = jnp.take(emb, ids, axis=0)                       # (B, T, Dp) bf16
        x_emb = (jnp.zeros((T, Bp, Dp), emb.dtype)
                 .at[:, :B, :].set(jnp.transpose(gathered, (1, 0, 2))))
        h0 = jnp.zeros((L, Bp, Hp), jnp.float32).at[:, :B, :H].set(hidden)

        step_map = lambda t: (t, 0, 0)       # streamed per step
        const3 = lambda t: (0, 0, 0)         # VMEM-resident across all steps
        const2 = lambda t: (0, 0)

        grid_spec = pltpu.PrefetchScalarGridSpec(
            num_scalar_prefetch=0,
            grid=(T,),
            in_specs=[
                pl.BlockSpec((1, Bp, Dp), step_map),
                pl.BlockSpec((L, Bp, Hp), const3),
                pl.BlockSpec(tuple(wih.shape), const3),
                pl.BlockSpec(tuple(whh.shape), const3),
                pl.BlockSpec(tuple(ba.shape), const3),
                pl.BlockSpec(tuple(bhn.shape), const3),
                pl.BlockSpec(tuple(fcw.shape), const2),
                pl.BlockSpec(tuple(fcb.shape), const2),
            ],
            out_specs=(
                pl.BlockSpec((1, Bp, Vp), step_map),
                pl.BlockSpec((L, Bp, Hp), const3),
            ),
            scratch_shapes=[pltpu.VMEM((L, Bp, Hp), jnp.float32)],
        )

        pred_p, hout_p = pl.pallas_call(
            decoder_kernel,
            grid_spec=grid_spec,
            out_shape=(
                jax.ShapeDtypeStruct((T, Bp, Vp), jnp.float32),
                jax.ShapeDtypeStruct((L, Bp, Hp), jnp.float32),
            ),
            compiler_params=pltpu.CompilerParams(
                dimension_semantics=("arbitrary",)),
        )(x_emb, h0, wih, whh, ba, bhn, fcw, fcb)

        preds = jnp.transpose(pred_p[:, :B, :V], (1, 0, 2))         # (B, T, V)
        return preds, hout_p[:, :B, :H]

    def forward(x, hidden):
        """Module-equivalent single step: x (B, 1) ids -> (prediction (B, V), hidden)."""
        preds, h = decode(x, hidden)
        return preds[:, 0, :], h

    return forward, decode


# -----------------------------------------------------------------------------
# Pure-JAX reference (unpadded, f32, PyTorch-layout params) for correctness check
# -----------------------------------------------------------------------------
def decoder_forward_ref(params, x, hidden):
    embedded = params["embedding"][x[:, 0]]
    layer_in = embedded
    new_hidden = []
    for l in range(hidden.shape[0]):
        h = hidden[l]
        H = h.shape[-1]
        gi = layer_in @ params["w_ih"][l].T + params["b_ih"][l]
        gh = h @ params["w_hh"][l].T + params["b_hh"][l]
        r = jax.nn.sigmoid(gi[:, :H] + gh[:, :H])
        z = jax.nn.sigmoid(gi[:, H:2 * H] + gh[:, H:2 * H])
        n = jnp.tanh(gi[:, 2 * H:] + r * gh[:, 2 * H:])
        h_new = (1.0 - z) * n + z * h
        new_hidden.append(h_new)
        layer_in = h_new
    prediction = layer_in @ params["fc_w"].T + params["fc_b"]
    return prediction, jnp.stack(new_hidden, axis=0)


def decoder_decode_ref(params, ids, hidden):
    preds = []
    h = hidden
    for t in range(ids.shape[1]):
        p, h = decoder_forward_ref(params, ids[:, t:t + 1], h)
        preds.append(p)
    return jnp.stack(preds, axis=1), h


# -----------------------------------------------------------------------------
# Deterministic parameter init (shapes match nn.Embedding / nn.GRU / nn.Linear)
# -----------------------------------------------------------------------------
def init_params(key, output_size, embed_size, hidden_size, num_layers):
    keys = jax.random.split(key, 4 + 4 * num_layers)
    ki = iter(keys)
    scale = 0.1

    params = {
        "embedding": scale * jax.random.normal(next(ki), (output_size, embed_size), jnp.float32),
        "w_ih": [],
        "w_hh": [],
        "b_ih": [],
        "b_hh": [],
        "fc_w": scale * jax.random.normal(next(ki), (output_size, hidden_size), jnp.float32),
        "fc_b": scale * jax.random.normal(next(ki), (output_size,), jnp.float32),
    }
    for l in range(num_layers):
        in_dim = embed_size if l == 0 else hidden_size
        params["w_ih"].append(scale * jax.random.normal(next(ki), (3 * hidden_size, in_dim), jnp.float32))
        params["w_hh"].append(scale * jax.random.normal(next(ki), (3 * hidden_size, hidden_size), jnp.float32))
        params["b_ih"].append(scale * jax.random.normal(next(ki), (3 * hidden_size,), jnp.float32))
        params["b_hh"].append(scale * jax.random.normal(next(ki), (3 * hidden_size,), jnp.float32))
    return params


# -----------------------------------------------------------------------------
# Main
# -----------------------------------------------------------------------------
if __name__ == "__main__":
    OUTPUT_SIZE = 32   # vocab size
    EMBED_SIZE = 16
    HIDDEN_SIZE = 32
    NUM_LAYERS = 2
    BATCH = 2
    T_STEPS = 4        # multi-step teacher-forced decode (time loop fused in-kernel)

    key = jax.random.PRNGKey(0)
    k_param, k_tok, k_hid = jax.random.split(key, 3)

    params = init_params(k_param, OUTPUT_SIZE, EMBED_SIZE, HIDDEN_SIZE, NUM_LAYERS)

    ids_seq = jax.random.randint(k_tok, (BATCH, T_STEPS), 0, OUTPUT_SIZE, dtype=jnp.int32)
    hidden = jax.random.normal(k_hid, (NUM_LAYERS, BATCH, HIDDEN_SIZE), jnp.float32)

    # One-time weight packing (pre-transpose + gate-block + pad + bf16).
    prepped = prepare_params(params, EMBED_SIZE, HIDDEN_SIZE, OUTPUT_SIZE)
    decoder_forward, decoder_decode = make_decoder(prepped, OUTPUT_SIZE, HIDDEN_SIZE)

    # bf16 weights (per performance review) -> loosened tolerance vs. the f32 reference.
    ATOL, RTOL = 5e-2, 2e-2

    # --- 1) Module-equivalent single step: x (B, 1), one GRU step, logits (B, V) ---
    x1 = ids_seq[:, :1]
    pred, new_hidden = decoder_forward(x1, hidden)
    pred = jax.block_until_ready(pred)
    new_hidden = jax.block_until_ready(new_hidden)

    pred_ref, hidden_ref = decoder_forward_ref(params, x1, hidden)
    assert pred.shape == (BATCH, OUTPUT_SIZE)
    assert new_hidden.shape == (NUM_LAYERS, BATCH, HIDDEN_SIZE)
    assert jnp.allclose(pred, pred_ref, atol=ATOL, rtol=RTOL)
    assert jnp.allclose(new_hidden, hidden_ref, atol=ATOL, rtol=RTOL)

    # --- 2) Fused T-step decode == T successive module forward calls ---
    preds_seq, final_hidden = decoder_decode(ids_seq, hidden)
    preds_seq = jax.block_until_ready(preds_seq)
    final_hidden = jax.block_until_ready(final_hidden)

    preds_ref, final_hidden_ref = decoder_decode_ref(params, ids_seq, hidden)
    assert preds_seq.shape == (BATCH, T_STEPS, OUTPUT_SIZE)
    assert final_hidden.shape == (NUM_LAYERS, BATCH, HIDDEN_SIZE)
    assert jnp.allclose(preds_seq, preds_ref, atol=ATOL, rtol=RTOL)
    assert jnp.allclose(final_hidden, final_hidden_ref, atol=ATOL, rtol=RTOL)

    print("KERNEL_OK")
</pallas_src>

<mosaic_0001>
module attributes {stable_mosaic.version = 11 : i64} {
  func.func @decoder_kernel(%arg0: i32, %arg1: memref<1x8x128xbf16, #tpu.memory_space<vmem>>, %arg2: memref<2x8x128xf32, #tpu.memory_space<vmem>>, %arg3: memref<2x128x384xbf16, #tpu.memory_space<vmem>>, %arg4: memref<2x128x384xbf16, #tpu.memory_space<vmem>>, %arg5: memref<2x1x384xf32, #tpu.memory_space<vmem>>, %arg6: memref<2x1x128xf32, #tpu.memory_space<vmem>>, %arg7: memref<128x128xbf16, #tpu.memory_space<vmem>>, %arg8: memref<1x128xf32, #tpu.memory_space<vmem>>, %arg9: memref<1x8x128xf32, #tpu.memory_space<vmem>>, %arg10: memref<2x8x128xf32, #tpu.memory_space<vmem>>, %arg11: memref<2x8x128xf32, #tpu.memory_space<vmem>>) attributes {dimension_semantics = [#tpu.dimension_semantics<arbitrary>], iteration_bounds = array<i64: 1>, scalar_prefetch = 0 : i64, scratch_operands = 1 : i64, tpu.core_type = #tpu.core_type<tc>, window_params = [{transform_indices = @transform_0, window_bounds = array<i64: 1, 8, 128>}, {pipeline_mode = #tpu.pipeline_mode<synchronous>, transform_indices = @transform_1, window_bounds = array<i64: 2, 8, 128>}, {pipeline_mode = #tpu.pipeline_mode<synchronous>, transform_indices = @transform_2, window_bounds = array<i64: 2, 128, 384>}, {pipeline_mode = #tpu.pipeline_mode<synchronous>, transform_indices = @transform_3, window_bounds = array<i64: 2, 128, 384>}, {pipeline_mode = #tpu.pipeline_mode<synchronous>, transform_indices = @transform_4, window_bounds = array<i64: 2, 1, 384>}, {pipeline_mode = #tpu.pipeline_mode<synchronous>, transform_indices = @transform_5, window_bounds = array<i64: 2, 1, 128>}, {pipeline_mode = #tpu.pipeline_mode<synchronous>, transform_indices = @transform_6, window_bounds = array<i64: 128, 128>}, {pipeline_mode = #tpu.pipeline_mode<synchronous>, transform_indices = @transform_7, window_bounds = array<i64: 1, 128>}, {transform_indices = @transform_8, window_bounds = array<i64: 1, 8, 128>}, {pipeline_mode = #tpu.pipeline_mode<synchronous>, transform_indices = @transform_9, window_bounds = array<i64: 2, 8, 128>}]} {
    %c0_i32 = arith.constant 0 : i32
    %0 = arith.cmpi eq, %arg0, %c0_i32 : i32
    %1 = arith.extui %0 : i1 to i32
    %c0_i32_0 = arith.constant 0 : i32
    %2 = arith.cmpi ne, %1, %c0_i32_0 : i32
    scf.if %2 {
      %c0_57 = arith.constant 0 : index
      %c0_58 = arith.constant 0 : index
      %c0_59 = arith.constant 0 : index
      %110 = vector.load %arg2[%c0_57, %c0_58, %c0_59] : memref<2x8x128xf32, #tpu.memory_space<vmem>>, vector<2x8x128xf32>
      %c0_60 = arith.constant 0 : index
      %c0_61 = arith.constant 0 : index
      %c0_62 = arith.constant 0 : index
      %111 = vector.load %arg11[%c0_60, %c0_61, %c0_62] : memref<2x8x128xf32, #tpu.memory_space<vmem>>, vector<2x8x128xf32>
      tpu.vector_store %arg11[%c0_60, %c0_61, %c0_62], %110 {strides = array<i32>} : memref<2x8x128xf32, #tpu.memory_space<vmem>>, vector<2x8x128xf32>,
    } else {
    }
    %c0 = arith.constant 0 : index
    %c0_1 = arith.constant 0 : index
    %c0_2 = arith.constant 0 : index
    %3 = vector.load %arg1[%c0, %c0_1, %c0_2] : memref<1x8x128xbf16, #tpu.memory_space<vmem>>, vector<1x8x128xbf16>
    %4 = vector.shape_cast %3 : vector<1x8x128xbf16> to vector<8x128xbf16>
    %c0_3 = arith.constant 0 : index
    %c0_4 = arith.constant 0 : index
    %c0_5 = arith.constant 0 : index
    %5 = vector.load %arg11[%c0_3, %c0_4, %c0_5] : memref<2x8x128xf32, #tpu.memory_space<vmem>>, vector<1x8x128xf32>
    %6 = vector.shape_cast %5 : vector<1x8x128xf32> to vector<8x128xf32>
    %c0_6 = arith.constant 0 : index
    %c0_7 = arith.constant 0 : index
    %c0_8 = arith.constant 0 : index
    %7 = vector.load %arg3[%c0_6, %c0_7, %c0_8] : memref<2x128x384xbf16, #tpu.memory_space<vmem>>, vector<1x128x384xbf16>
    %8 = vector.shape_cast %7 : vector<1x128x384xbf16> to vector<128x384xbf16>
    %cst = arith.constant dense<0.000000e+00> : vector<8x384xf32>
    %9 = tpu.matmul %4, %8, %cst {dimension_numbers = #tpu.dot_dimension_numbers<[1], [0], [0], [1], [0, 0, 1, 1], [], []>} : vector<8x128xbf16>, vector<128x384xbf16>, vector<8x384xf32> -> vector<8x384xf32>
    %c0_9 = arith.constant 0 : index
    %c0_10 = arith.constant 0 : index
    %c0_11 = arith.constant 0 : index
    %10 = vector.load %arg5[%c0_9, %c0_10, %c0_11] : memref<2x1x384xf32, #tpu.memory_space<vmem>>, vector<1x1x384xf32>
    %11 = vector.shape_cast %10 : vector<1x1x384xf32> to vector<1x384xf32>
    %12 = vector.broadcast %11 : vector<1x384xf32> to vector<8x384xf32>
    %13 = arith.addf %9, %12 : vector<8x384xf32>
    %14 = arith.truncf %6 : vector<8x128xf32> to vector<8x128xbf16>
    %c0_12 = arith.constant 0 : index
    %c0_13 = arith.constant 0 : index
    %c0_14 = arith.constant 0 : index
    %15 = vector.load %arg4[%c0_12, %c0_13, %c0_14] : memref<2x128x384xbf16, #tpu.memory_space<vmem>>, vector<1x128x384xbf16>
    %16 = vector.shape_cast %15 : vector<1x128x384xbf16> to vector<128x384xbf16>
    %cst_15 = arith.constant dense<0.000000e+00> : vector<8x384xf32>
    %17 = tpu.matmul %14, %16, %cst_15 {dimension_numbers = #tpu.dot_dimension_numbers<[1], [0], [0], [1], [0, 0, 1, 1], [], []>} : vector<8x128xbf16>, vector<128x384xbf16>, vector<8x384xf32> -> vector<8x384xf32>
    %18 = vector.extract_strided_slice %13 {offsets = [0, 0], sizes = [8, 128], strides = [1, 1]} : vector<8x384xf32> to vector<8x128xf32>
    %19 = vector.extract_strided_slice %17 {offsets = [0, 0], sizes = [8, 128], strides = [1, 1]} : vector<8x384xf32> to vector<8x128xf32>
    %20 = arith.addf %18, %19 : vector<8x128xf32>
    %21 = arith.negf %20 : vector<8x128xf32>
    %22 = math.exp %21 : vector<8x128xf32>
    %cst_16 = arith.constant 1.000000e+00 : f32
    %23 = vector.broadcast %cst_16 : f32 to vector<8x128xf32>
    %24 = arith.addf %23, %22 : vector<8x128xf32>
    %25 = arith.divf %23, %24 : vector<8x128xf32>
    %26 = vector.extract_strided_slice %13 {offsets = [0, 128], sizes = [8, 128], strides = [1, 1]} : vector<8x384xf32> to vector<8x128xf32>
    %27 = vector.extract_strided_slice %17 {offsets = [0, 128], sizes = [8, 128], strides = [1, 1]} : vector<8x384xf32> to vector<8x128xf32>
    %28 = arith.addf %26, %27 : vector<8x128xf32>
    %29 = arith.negf %28 : vector<8x128xf32>
    %30 = math.exp %29 : vector<8x128xf32>
    %cst_17 = arith.constant 1.000000e+00 : f32
    %31 = vector.broadcast %cst_17 : f32 to vector<8x128xf32>
    %32 = arith.addf %31, %30 : vector<8x128xf32>
    %33 = arith.divf %31, %32 : vector<8x128xf32>
    %34 = vector.extract_strided_slice %13 {offsets = [0, 256], sizes = [8, 128], strides = [1, 1]} : vector<8x384xf32> to vector<8x128xf32>
    %35 = vector.extract_strided_slice %17 {offsets = [0, 256], sizes = [8, 128], strides = [1, 1]} : vector<8x384xf32> to vector<8x128xf32>
    %c0_18 = arith.constant 0 : index
    %c0_19 = arith.constant 0 : index
    %c0_20 = arith.constant 0 : index
    %36 = vector.load %arg6[%c0_18, %c0_19, %c0_20] : memref<2x1x128xf32, #tpu.memory_space<vmem>>, vector<1x1x128xf32>
    %37 = vector.shape_cast %36 : vector<1x1x128xf32> to vector<1x128xf32>
    %38 = vector.broadcast %37 : vector<1x128xf32> to vector<8x128xf32>
    %39 = arith.addf %35, %38 : vector<8x128xf32>
    %40 = arith.mulf %25, %39 : vector<8x128xf32>
    %41 = arith.addf %34, %40 : vector<8x128xf32>
    %42 = math.tanh %41 : vector<8x128xf32>
    %cst_21 = arith.constant 1.000000e+00 : f32
    %43 = vector.broadcast %cst_21 : f32 to vector<8x128xf32>
    %44 = arith.subf %43, %33 : vector<8x128xf32>
    %45 = arith.mulf %44, %42 : vector<8x128xf32>
    %46 = arith.mulf %33, %6 : vector<8x128xf32>
    %47 = arith.addf %45, %46 : vector<8x128xf32>
    %c0_22 = arith.constant 0 : index
    %c0_23 = arith.constant 0 : index
    %c0_24 = arith.constant 0 : index
    %48 = vector.load %arg11[%c0_22, %c0_23, %c0_24] : memref<2x8x128xf32, #tpu.memory_space<vmem>>, vector<1x8x128xf32>
    %49 = vector.shape_cast %48 : vector<1x8x128xf32> to vector<8x128xf32>
    %50 = vector.shape_cast %47 : vector<8x128xf32> to vector<1x8x128xf32>
    tpu.vector_store %arg11[%c0_22, %c0_23, %c0_24], %50 {strides = array<i32>} : memref<2x8x128xf32, #tpu.memory_space<vmem>>, vector<1x8x128xf32>,
    %51 = arith.truncf %47 : vector<8x128xf32> to vector<8x128xbf16>
    %c1 = arith.constant 1 : index
    %c0_25 = arith.constant 0 : index
    %c0_26 = arith.constant 0 : index
    %52 = vector.load %arg11[%c1, %c0_25, %c0_26] : memref<2x8x128xf32, #tpu.memory_space<vmem>>, vector<1x8x128xf32>
    %53 = vector.shape_cast %52 : vector<1x8x128xf32> to vector<8x128xf32>
    %c1_27 = arith.constant 1 : index
    %c0_28 = arith.constant 0 : index
    %c0_29 = arith.constant 0 : index
    %54 = vector.load %arg3[%c1_27, %c0_28, %c0_29] : memref<2x128x384xbf16, #tpu.memory_space<vmem>>, vector<1x128x384xbf16>
    %55 = vector.shape_cast %54 : vector<1x128x384xbf16> to vector<128x384xbf16>
    %cst_30 = arith.constant dense<0.000000e+00> : vector<8x384xf32>
    %56 = tpu.matmul %51, %55, %cst_30 {dimension_numbers = #tpu.dot_dimension_numbers<[1], [0], [0], [1], [0, 0, 1, 1], [], []>} : vector<8x128xbf16>, vector<128x384xbf16>, vector<8x384xf32> -> vector<8x384xf32>
    %c1_31 = arith.constant 1 : index
    %c0_32 = arith.constant 0 : index
    %c0_33 = arith.constant 0 : index
    %57 = vector.load %arg5[%c1_31, %c0_32, %c0_33] : memref<2x1x384xf32, #tpu.memory_space<vmem>>, vector<1x1x384xf32>
    %58 = vector.shape_cast %57 : vector<1x1x384xf32> to vector<1x384xf32>
    %59 = vector.broadcast %58 : vector<1x384xf32> to vector<8x384xf32>
    %60 = arith.addf %56, %59 : vector<8x384xf32>
    %61 = arith.truncf %53 : vector<8x128xf32> to vector<8x128xbf16>
    %c1_34 = arith.constant 1 : index
    %c0_35 = arith.constant 0 : index
    %c0_36 = arith.constant 0 : index
    %62 = vector.load %arg4[%c1_34, %c0_35, %c0_36] : memref<2x128x384xbf16, #tpu.memory_space<vmem>>, vector<1x128x384xbf16>
    %63 = vector.shape_cast %62 : vector<1x128x384xbf16> to vector<128x384xbf16>
    %cst_37 = arith.constant dense<0.000000e+00> : vector<8x384xf32>
    %64 = tpu.matmul %61, %63, %cst_37 {dimension_numbers = #tpu.dot_dimension_numbers<[1], [0], [0], [1], [0, 0, 1, 1], [], []>} : vector<8x128xbf16>, vector<128x384xbf16>, vector<8x384xf32> -> vector<8x384xf32>
    %65 = vector.extract_strided_slice %60 {offsets = [0, 0], sizes = [8, 128], strides = [1, 1]} : vector<8x384xf32> to vector<8x128xf32>
    %66 = vector.extract_strided_slice %64 {offsets = [0, 0], sizes = [8, 128], strides = [1, 1]} : vector<8x384xf32> to vector<8x128xf32>
    %67 = arith.addf %65, %66 : vector<8x128xf32>
    %68 = arith.negf %67 : vector<8x128xf32>
    %69 = math.exp %68 : vector<8x128xf32>
    %cst_38 = arith.constant 1.000000e+00 : f32
    %70 = vector.broadcast %cst_38 : f32 to vector<8x128xf32>
    %71 = arith.addf %70, %69 : vector<8x128xf32>
    %72 = arith.divf %70, %71 : vector<8x128xf32>
    %73 = vector.extract_strided_slice %60 {offsets = [0, 128], sizes = [8, 128], strides = [1, 1]} : vector<8x384xf32> to vector<8x128xf32>
    %74 = vector.extract_strided_slice %64 {offsets = [0, 128], sizes = [8, 128], strides = [1, 1]} : vector<8x384xf32> to vector<8x128xf32>
    %75 = arith.addf %73, %74 : vector<8x128xf32>
    %76 = arith.negf %75 : vector<8x128xf32>
    %77 = math.exp %76 : vector<8x128xf32>
    %cst_39 = arith.constant 1.000000e+00 : f32
    %78 = vector.broadcast %cst_39 : f32 to vector<8x128xf32>
    %79 = arith.addf %78, %77 : vector<8x128xf32>
    %80 = arith.divf %78, %79 : vector<8x128xf32>
    %81 = vector.extract_strided_slice %60 {offsets = [0, 256], sizes = [8, 128], strides = [1, 1]} : vector<8x384xf32> to vector<8x128xf32>
    %82 = vector.extract_strided_slice %64 {offsets = [0, 256], sizes = [8, 128], strides = [1, 1]} : vector<8x384xf32> to vector<8x128xf32>
    %c1_40 = arith.constant 1 : index
    %c0_41 = arith.constant 0 : index
    %c0_42 = arith.constant 0 : index
    %83 = vector.load %arg6[%c1_40, %c0_41, %c0_42] : memref<2x1x128xf32, #tpu.memory_space<vmem>>, vector<1x1x128xf32>
    %84 = vector.shape_cast %83 : vector<1x1x128xf32> to vector<1x128xf32>
    %85 = vector.broadcast %84 : vector<1x128xf32> to vector<8x128xf32>
    %86 = arith.addf %82, %85 : vector<8x128xf32>
    %87 = arith.mulf %72, %86 : vector<8x128xf32>
    %88 = arith.addf %81, %87 : vector<8x128xf32>
    %89 = math.tanh %88 : vector<8x128xf32>
    %cst_43 = arith.constant 1.000000e+00 : f32
    %90 = vector.broadcast %cst_43 : f32 to vector<8x128xf32>
    %91 = arith.subf %90, %80 : vector<8x128xf32>
    %92 = arith.mulf %91, %89 : vector<8x128xf32>
    %93 = arith.mulf %80, %53 : vector<8x128xf32>
    %94 = arith.addf %92, %93 : vector<8x128xf32>
    %c1_44 = arith.constant 1 : index
    %c0_45 = arith.constant 0 : index
    %c0_46 = arith.constant 0 : index
    %95 = vector.load %arg11[%c1_44, %c0_45, %c0_46] : memref<2x8x128xf32, #tpu.memory_space<vmem>>, vector<1x8x128xf32>
    %96 = vector.shape_cast %95 : vector<1x8x128xf32> to vector<8x128xf32>
    %97 = vector.shape_cast %94 : vector<8x128xf32> to vector<1x8x128xf32>
    tpu.vector_store %arg11[%c1_44, %c0_45, %c0_46], %97 {strides = array<i32>} : memref<2x8x128xf32, #tpu.memory_space<vmem>>, vector<1x8x128xf32>,
    %98 = arith.truncf %94 : vector<8x128xf32> to vector<8x128xbf16>
    %c0_47 = arith.constant 0 : index
    %c0_48 = arith.constant 0 : index
    %99 = vector.load %arg7[%c0_47, %c0_48] : memref<128x128xbf16, #tpu.memory_space<vmem>>, vector<128x128xbf16>
    %cst_49 = arith.constant dense<0.000000e+00> : vector<8x128xf32>
    %100 = tpu.matmul %98, %99, %cst_49 {dimension_numbers = #tpu.dot_dimension_numbers<[1], [0], [0], [1], [0, 0, 1, 1], [], []>} : vector<8x128xbf16>, vector<128x128xbf16>, vector<8x128xf32> -> vector<8x128xf32>
    %c0_50 = arith.constant 0 : index
    %c0_51 = arith.constant 0 : index
    %101 = vector.load %arg8[%c0_50, %c0_51] : memref<1x128xf32, #tpu.memory_space<vmem>>, vector<1x128xf32>
    %102 = vector.broadcast %101 : vector<1x128xf32> to vector<8x128xf32>
    %103 = arith.addf %100, %102 : vector<8x128xf32>
    %c0_52 = arith.constant 0 : index
    %c0_53 = arith.constant 0 : index
    %c0_54 = arith.constant 0 : index
    %104 = vector.load %arg9[%c0_52, %c0_53, %c0_54] : memref<1x8x128xf32, #tpu.memory_space<vmem>>, vector<1x8x128xf32>
    %105 = vector.shape_cast %104 : vector<1x8x128xf32> to vector<8x128xf32>
    %106 = vector.shape_cast %103 : vector<8x128xf32> to vector<1x8x128xf32>
    tpu.vector_store %arg9[%c0_52, %c0_53, %c0_54], %106 {strides = array<i32>} : memref<1x8x128xf32, #tpu.memory_space<vmem>>, vector<1x8x128xf32>,
    %c0_i32_55 = arith.constant 0 : i32
    %107 = arith.cmpi eq, %arg0, %c0_i32_55 : i32
    %108 = arith.extui %107 : i1 to i32
    %c0_i32_56 = arith.constant 0 : i32
    %109 = arith.cmpi ne, %108, %c0_i32_56 : i32
    scf.if %109 {
      %c0_57 = arith.constant 0 : index
      %c0_58 = arith.constant 0 : index
      %c0_59 = arith.constant 0 : index
      %110 = vector.load %arg11[%c0_57, %c0_58, %c0_59] : memref<2x8x128xf32, #tpu.memory_space<vmem>>, vector<2x8x128xf32>
      %c0_60 = arith.constant 0 : index
      %c0_61 = arith.constant 0 : index
      %c0_62 = arith.constant 0 : index
      %111 = vector.load %arg10[%c0_60, %c0_61, %c0_62] : memref<2x8x128xf32, #tpu.memory_space<vmem>>, vector<2x8x128xf32>
      tpu.vector_store %arg10[%c0_60, %c0_61, %c0_62], %110 {strides = array<i32>} : memref<2x8x128xf32, #tpu.memory_space<vmem>>, vector<2x8x128xf32>,
    } else {
    }
    return
  }
  func.func @transform_0(%arg0: i32) -> (i32, i32, i32) {
    %c0_i32 = arith.constant 0 : i32
    %c0_i32_0 = arith.constant 0 : i32
    %c0_i32_1 = arith.constant 0 : i32
    return %arg0, %c0_i32, %c0_i32_0 : i32, i32, i32
  }
  func.func @transform_1(%arg0: i32) -> (i32, i32, i32) {
    %c0_i32 = arith.constant 0 : i32
    %c0_i32_0 = arith.constant 0 : i32
    %c0_i32_1 = arith.constant 0 : i32
    %c0_i32_2 = arith.constant 0 : i32
    return %c0_i32, %c0_i32_0, %c0_i32_1 : i32, i32, i32
  }
  func.func @transform_2(%arg0: i32) -> (i32, i32, i32) {
    %c0_i32 = arith.constant 0 : i32
    %c0_i32_0 = arith.constant 0 : i32
    %c0_i32_1 = arith.constant 0 : i32
    %c0_i32_2 = arith.constant 0 : i32
    return %c0_i32, %c0_i32_0, %c0_i32_1 : i32, i32, i32
  }
  func.func @transform_3(%arg0: i32) -> (i32, i32, i32) {
    %c0_i32 = arith.constant 0 : i32
    %c0_i32_0 = arith.constant 0 : i32
    %c0_i32_1 = arith.constant 0 : i32
    %c0_i32_2 = arith.constant 0 : i32
    return %c0_i32, %c0_i32_0, %c0_i32_1 : i32, i32, i32
  }
  func.func @transform_4(%arg0: i32) -> (i32, i32, i32) {
    %c0_i32 = arith.constant 0 : i32
    %c0_i32_0 = arith.constant 0 : i32
    %c0_i32_1 = arith.constant 0 : i32
    %c0_i32_2 = arith.constant 0 : i32
    return %c0_i32, %c0_i32_0, %c0_i32_1 : i32, i32, i32
  }
  func.func @transform_5(%arg0: i32) -> (i32, i32, i32) {
    %c0_i32 = arith.constant 0 : i32
    %c0_i32_0 = arith.constant 0 : i32
    %c0_i32_1 = arith.constant 0 : i32
    %c0_i32_2 = arith.constant 0 : i32
    return %c0_i32, %c0_i32_0, %c0_i32_1 : i32, i32, i32
  }
  func.func @transform_6(%arg0: i32) -> (i32, i32) {
    %c0_i32 = arith.constant 0 : i32
    %c0_i32_0 = arith.constant 0 : i32
    %c0_i32_1 = arith.constant 0 : i32
    return %c0_i32, %c0_i32_0 : i32, i32
  }
  func.func @transform_7(%arg0: i32) -> (i32, i32) {
    %c0_i32 = arith.constant 0 : i32
    %c0_i32_0 = arith.constant 0 : i32
    %c0_i32_1 = arith.constant 0 : i32
    return %c0_i32, %c0_i32_0 : i32, i32
  }
  func.func @transform_8(%arg0: i32) -> (i32, i32, i32) {
    %c0_i32 = arith.constant 0 : i32
    %c0_i32_0 = arith.constant 0 : i32
    %c0_i32_1 = arith.constant 0 : i32
    return %arg0, %c0_i32, %c0_i32_0 : i32, i32, i32
  }
  func.func @transform_9(%arg0: i32) -> (i32, i32, i32) {
    %c0_i32 = arith.constant 0 : i32
    %c0_i32_0 = arith.constant 0 : i32
    %c0_i32_1 = arith.constant 0 : i32
    %c0_i32_2 = arith.constant 0 : i32
    return %c0_i32, %c0_i32_0, %c0_i32_1 : i32, i32, i32
  }
}

</mosaic_0001>

<bundles_post_ra>
// kernel: decode.1
= control target key start
LH: loop header
LB: loop body
LE: loop exit
PB: predicated region body
PF: predicated region fallthrough
CT: control target
= control target key end

     0   :  { %v1730_v1 = vmov 0.0   ;;  %v1731_v2 = vmov 0   ;;  %vm1732_vm0 = vmmov 0   ;;  %s2209_s2 = inlined_call_operand.vmem [shape: bf16[2,128,384], index: 2, kind: input, shape index: {}]   ;;  %s2210_s3 = inlined_call_operand.vmem [shape: bf16[2,128,384], index: 3, kind: input, shape index: {}]   ;;  %s2211_s0 = inlined_call_operand.vmem [shape: bf16[1,8,128], index: 0, kind: input, shape index: {}]   ;;  %s2212_s1 = inlined_call_operand.vmem [shape: f32[2,8,128], index: 1, kind: input, shape index: {}]   ;;  %s2213_s4 = inlined_call_operand.vmem [shape: f32[2,1,384], index: 4, kind: input, shape index: {}]   ;;  %s2214_s5 = inlined_call_operand.vmem [shape: f32[2,1,128], index: 5, kind: input, shape index: {}]   ;;  %s2215_s9 = inlined_call_operand.vmem [shape: f32[2,8,128], index: 9, kind: output, shape index: {1}]   ;;  %s2216_s6 = inlined_call_operand.vmem [shape: bf16[128,128], index: 6, kind: input, shape index: {}]   ;;  %s2217_s7 = inlined_call_operand.vmem [shape: f32[1,128], index: 7, kind: input, shape index: {}]   ;;  %s2218_s8 = inlined_call_operand.vmem [shape: f32[1,8,128], index: 8, kind: output, shape index: {0}]  }
   0x1   :  { %v1574_v0 = vld [vmem:[%s2209_s2 + $0x4] ss:$12 sps:$4 sm:$0xff]   ;;  %1459 = vmatprep.subr.bf16.mxu1 %v1730_v1  ;;  %251 = vmatprep.mubr.bf16.mxu0 %v1731_v2  ;;  %v1576_v3 = vld [vmem:[%s2209_s2] ss:$12 sps:$4 sm:$0xff]   ;;  %v1577_v4 = vld [vmem:[%s2209_s2 + $0x1c] ss:$12 sps:$4 sm:$0xff]  }
   0x2   :  { %1475 = vmatprep.mubr.msk.bf16.mxu1 %vm1732_vm0, %v1730_v1  ;;  %219 = vmatprep.subr.bf16.mxu0 %v1574_v0  ;;  %v1579_v5 = vld [vmem:[%s2209_s2 + $0x18] ss:$12 sps:$4 sm:$0xff]   ;;  %v1580_v6 = vld [vmem:[%s2209_s2 + $0x34] ss:$12 sps:$4 sm:$0xff]   ;;  %v1582_v7 = vld [vmem:[%s2209_s2 + $0x30] ss:$12 sps:$4 sm:$0xff]  }
   0x3   :  { %220 = vmatpush1.bf16.msra.mxu0 %v1576_v3  ;;  %v1583_v8 = vld [vmem:[%s2209_s2 + $0x4c] ss:$12 sps:$4 sm:$0xff]   ;;  %v1594_v9 = vld [vmem:[%s2209_s2 + $0x8] ss:$12 sps:$4 sm:$0xff]   ;;  %v1586_v11 = vld [vmem:[%s2209_s2 + $0x64] ss:$12 sps:$4 sm:$0xff]  }
   0x4   :  { %221 = vmatprep.subr.bf16.mxu0 %v1577_v4  ;;  %v1585_v10 = vld [vmem:[%s2209_s2 + $0x48] ss:$12 sps:$4 sm:$0xff]   ;;  %1460 = vmatpush3.bf16.msra.mxu1 %v1594_v9  ;;  %v1598_v12 = vld [vmem:[%s2209_s2 + $0x20] ss:$12 sps:$4 sm:$0xff]   ;;  %v1600_v14 = vld [vmem:[%s2209_s2 + $0x38] ss:$12 sps:$4 sm:$0xff]  }
   0x5   :  { %1461 = vmatprep.subr.bf16.mxu1 %v1730_v1  ;;  %v1588_v13 = vld [vmem:[%s2209_s2 + $0x60] ss:$12 sps:$4 sm:$0xff]   ;;  %v1589_v15 = vld [vmem:[%s2209_s2 + $0x7c] ss:$12 sps:$4 sm:$0xff]   ;;  %v1591_v16 = vld [vmem:[%s2209_s2 + $0x78] ss:$12 sps:$4 sm:$0xff]  }
   0x6   :  { %v1604_v17 = vld [vmem:[%s2209_s2 + $0x50] ss:$12 sps:$4 sm:$0xff]   ;;  %v1592_v18 = vld [vmem:[%s2209_s2 + $0x94] ss:$12 sps:$4 sm:$0xff]   ;;  %v1596_v21 = vld [vmem:[%s2209_s2 + $0xac] ss:$12 sps:$4 sm:$0xff]  }
   0x7   :  { %222 = vmatpush1.bf16.msra.mxu0 %v1579_v5  ;;  %v1595_v19 = vld [vmem:[%s2209_s2 + $0x90] ss:$12 sps:$4 sm:$0xff]   ;;  %v1608_v20 = vld [vmem:[%s2209_s2 + $0x68] ss:$12 sps:$4 sm:$0xff]   ;;  %v1612_v23 = vld [vmem:[%s2209_s2 + $0x80] ss:$12 sps:$4 sm:$0xff]  }
   0x8   :  { %223 = vmatprep.subr.bf16.mxu0 %v1580_v6  ;;  %1462 = vmatpush3.bf16.msra.mxu1 %v1598_v12  ;;  %v1599_v22 = vld [vmem:[%s2209_s2 + $0xa8] ss:$12 sps:$4 sm:$0xff]   ;;  %v1603_v24 = vld [vmem:[%s2210_s3 + $0x4] ss:$12 sps:$4 sm:$0xff]   ;;  %v1601_v25 = vld [vmem:[%s2210_s3] ss:$12 sps:$4 sm:$0xff]  }
   0x9   :  { %1463 = vmatprep.subr.bf16.mxu1 %v1730_v1  ;;  %v40_v26 = vld [vmem:[%s2211_s0] sm:$0xf]  ;;  %v1616_v27 = vld [vmem:[%s2209_s2 + $0x98] ss:$12 sps:$4 sm:$0xff]   ;;  %v1607_v28 = vld [vmem:[%s2210_s3 + $0x1c] ss:$12 sps:$4 sm:$0xff]  }
   0xa   :  { %v1605_v29 = vld [vmem:[%s2210_s3 + $0x18] ss:$12 sps:$4 sm:$0xff]   ;;  %v1620_v30 = vld [vmem:[%s2209_s2 + $0xb0] ss:$12 sps:$4 sm:$0xff]   ;;  %v1611_v31 = vld [vmem:[%s2210_s3 + $0x34] ss:$12 sps:$4 sm:$0xff]  }
   0xb   :  { %224 = vmatpush1.bf16.msra.mxu0 %v1582_v7  ;;  %v1609_v32 = vld [vmem:[%s2210_s3 + $0x30] ss:$12 sps:$4 sm:$0xff]   ;;  %v1615_v33 = vld [vmem:[%s2210_s3 + $0x4c] ss:$12 sps:$4 sm:$0xff]   ;;  %v1627_v34 = vld [vmem:[%s2210_s3 + $0x8] ss:$12 sps:$4 sm:$0xff]  }
   0xc   :  { %225 = vmatprep.subr.bf16.mxu0 %v1583_v8  ;;  %1464 = vmatpush3.bf16.msra.mxu1 %v1600_v14  ;;  %v1613_v35 = vld [vmem:[%s2210_s3 + $0x48] ss:$12 sps:$4 sm:$0xff]   ;;  %v1631_v36 = vld [vmem:[%s2210_s3 + $0x20] ss:$12 sps:$4 sm:$0xff]   ;;  %v1619_v37 = vld [vmem:[%s2210_s3 + $0x64] ss:$12 sps:$4 sm:$0xff]  }
   0xd   :  { %1465 = vmatprep.subr.bf16.mxu1 %v1730_v1  ;;  %v1617_v38 = vld [vmem:[%s2210_s3 + $0x60] ss:$12 sps:$4 sm:$0xff]   ;;  %v1632_v39 = vld [vmem:[%s2210_s3 + $0x38] ss:$12 sps:$4 sm:$0xff]   ;;  %v1623_v40 = vld [vmem:[%s2210_s3 + $0x7c] ss:$12 sps:$4 sm:$0xff]  }
   0xe   :  { %v1621_v41 = vld [vmem:[%s2210_s3 + $0x78] ss:$12 sps:$4 sm:$0xff]   ;;  %v1633_v42 = vld [vmem:[%s2210_s3 + $0x50] ss:$12 sps:$4 sm:$0xff]   ;;  %v1626_v43 = vld [vmem:[%s2210_s3 + $0x94] ss:$12 sps:$4 sm:$0xff]  }
   0xf   :  { %226 = vmatpush1.bf16.msra.mxu0 %v1585_v10  ;;  %v1624_v44 = vld [vmem:[%s2210_s3 + $0x90] ss:$12 sps:$4 sm:$0xff]   ;;  %v1634_v45 = vld [vmem:[%s2210_s3 + $0x68] ss:$12 sps:$4 sm:$0xff]   ;;  %v1630_v46 = vld [vmem:[%s2210_s3 + $0xac] ss:$12 sps:$4 sm:$0xff]  }
  0x10   :  { %227 = vmatprep.subr.bf16.mxu0 %v1586_v11  ;;  %1466 = vmatpush3.bf16.msra.mxu1 %v1604_v17  ;;  %v1628_v47 = vld [vmem:[%s2210_s3 + $0xa8] ss:$12 sps:$4 sm:$0xff]   ;;  %v1943_v48 = vld [vmem:[%s2212_s1] sm:$0xff]  ;;  %v1637_v52 = vld [vmem:[%s2210_s3 + $0xb0] ss:$12 sps:$4 sm:$0xff]  }
  0x11   :  { %1467 = vmatprep.subr.bf16.mxu1 %v1730_v1  ;;  %v1635_v49 = vld [vmem:[%s2210_s3 + $0x80] ss:$12 sps:$4 sm:$0xff]   ;;  %v300_v50 = vpack.c.bf16 %v1943_v48, %v1943_v48  ;;  %v1636_v51 = vld [vmem:[%s2210_s3 + $0x98] ss:$12 sps:$4 sm:$0xff]   ;;  %v1641_v55 = vld [vmem:[%s2209_s2 + $0xc8] ss:$12 sps:$4 sm:$0xff]  }
  0x12   :  { %v1640_v53 = vld [vmem:[%s2209_s2 + $0xc4] ss:$12 sps:$4 sm:$0xff]   ;;  %v1638_v54 = vld [vmem:[%s2209_s2 + $0xc0] ss:$12 sps:$4 sm:$0xff]   ;;  %v1644_v57 = vld [vmem:[%s2209_s2 + $0xdc] ss:$12 sps:$4 sm:$0xff]  }
  0x13   :  { %228 = vmatpush1.bf16.msra.mxu0 %v1588_v13  ;;  %v1642_v56 = vld [vmem:[%s2209_s2 + $0xd8] ss:$12 sps:$4 sm:$0xff]   ;;  %v1645_v58 = vld [vmem:[%s2209_s2 + $0xe0] ss:$12 sps:$4 sm:$0xff]   ;;  %v1646_v60 = vld [vmem:[%s2209_s2 + $0xf0] ss:$12 sps:$4 sm:$0xff]  }
  0x14   :  { %229 = vmatprep.subr.bf16.mxu0 %v1589_v15  ;;  %1468 = vmatpush3.bf16.msra.mxu1 %v1608_v20  ;;  %v1648_v59 = vld [vmem:[%s2209_s2 + $0xf4] ss:$12 sps:$4 sm:$0xff]   ;;  %v1649_v61 = vld [vmem:[%s2209_s2 + $0xf8] ss:$12 sps:$4 sm:$0xff]   ;;  %v1653_v0 = vld [vmem:[%s2209_s2 + $0x110] ss:$12 sps:$4 sm:$0xff]   ;;  %v76_v20 = vlaneseq }
  0x15   :  { %1469 = vmatprep.subr.bf16.mxu1 %v1730_v1  ;;  %v1652_v62 = vld [vmem:[%s2209_s2 + $0x10c] ss:$12 sps:$4 sm:$0xff]   ;;  %v1650_v63 = vld [vmem:[%s2209_s2 + $0x108] ss:$12 sps:$4 sm:$0xff]   ;;  %v1656_v3 = vld [vmem:[%s2209_s2 + $0x124] ss:$12 sps:$4 sm:$0xff]  }
  0x16   :  { %v1654_v4 = vld [vmem:[%s2209_s2 + $0x120] ss:$12 sps:$4 sm:$0xff]   ;;  %v1657_v5 = vld [vmem:[%s2209_s2 + $0x128] ss:$12 sps:$4 sm:$0xff]   ;;  %v1658_v7 = vld [vmem:[%s2209_s2 + $0x138] ss:$12 sps:$4 sm:$0xff]  }
  0x17   :  { %230 = vmatpush1.bf16.msra.mxu0 %v1591_v16  ;;  %v1660_v6 = vld [vmem:[%s2209_s2 + $0x13c] ss:$12 sps:$4 sm:$0xff]   ;;  %v1661_v8 = vld [vmem:[%s2209_s2 + $0x140] ss:$12 sps:$4 sm:$0xff]   ;;  %v1665_v11 = vld [vmem:[%s2209_s2 + $0x158] ss:$12 sps:$4 sm:$0xff]  }
  0x18   :  { %231 = vmatprep.subr.bf16.mxu0 %v1592_v18  ;;  %1470 = vmatpush3.bf16.msra.mxu1 %v1612_v23  ;;  %v1664_v9 = vld [vmem:[%s2209_s2 + $0x154] ss:$12 sps:$4 sm:$0xff]   ;;  %v1662_v10 = vld [vmem:[%s2209_s2 + $0x150] ss:$12 sps:$4 sm:$0xff]   ;;  %v1668_v12 = vld [vmem:[%s2209_s2 + $0x16c] ss:$12 sps:$4 sm:$0xff]  }
  0x19   :  { %1471 = vmatprep.subr.bf16.mxu1 %v1730_v1  ;;  %v1666_v13 = vld [vmem:[%s2209_s2 + $0x168] ss:$12 sps:$4 sm:$0xff]   ;;  %v1669_v14 = vld [vmem:[%s2209_s2 + $0x170] ss:$12 sps:$4 sm:$0xff]   ;;  %v74_v23 = vld [vmem:[%s2213_s4] sm:$0x7] }
  0x1a   :  { %v1672_v15 = vld [vmem:[%s2210_s3 + $0xc4] ss:$12 sps:$4 sm:$0xff]  }
  0x1b   :  { %232 = vmatpush1.bf16.msra.mxu0 %v1595_v19 }
  0x1c   :  { %233 = vmatprep.subr.bf16.mxu0 %v1596_v21  ;;  %1472 = vmatpush3.bf16.msra.mxu1 %v1616_v27  ;;  %v2046_v21 = vshrl.u32 %v76_v20, 7  ;;  %v1702_v20 = vld [vmem:[%s2216_s6] sm:$0xff]  }
  0x1d   :  { %1473 = vmatprep.subr.bf16.mxu1 %v1730_v1 }
  0x1f   :  { %234 = vmatpush1.bf16.msra.mxu0 %v1599_v22  ;;  %v78_v22 = vsub.s32 0, %v2046_v21 }
  0x20   :  { %461 = vmatprep.subr.bf16.mxu0 %v1603_v24  ;;  %1474 = vmatpush3.bf16.msra.mxu1 %v1620_v30  ;;  %v82_v24 = vsub.s32 1, %v2046_v21 }
  0x21   :  { %1479 = vmatprep.subr.bf16.mxu1 %v1730_v1 }
  0x22   :  { %252 = vmatmul.mubr.bf16.vlgmr.msra.gmra.mrb[0].mxu0 %v40_v26  ;;  %v83_v27 = vrot.slane %v74_v23, %v82_v24 }
  0x23   :  { %462 = vmatpush1.bf16.msra.mxu0 %v1601_v25  ;;  %493 = vmatprep.mubr.bf16.mxu0 %v1731_v2  ;;  %v79_v25 = vrot.slane %v74_v23, %v78_v22 }
  0x24   :  { %463 = vmatprep.subr.bf16.mxu0 %v1607_v28  ;;  %1476 = vmatmul.mubr.bf16.vlgmr.msra.gmra.mrb[0].mxu1 %v40_v26 }
  0x25   :  { %1480 = vmatpush3.bf16.msra.mxu1 %v1627_v34  ;;  %1495 = vmatprep.mubr.msk.bf16.mxu1 %vm1732_vm0, %v1730_v1 }
  0x26   :  { %1481 = vmatprep.subr.bf16.mxu1 %v1730_v1 }
  0x27   :  { %464 = vmatpush1.bf16.msra.mxu0 %v1605_v29 }
  0x28   :  { %465 = vmatprep.subr.bf16.mxu0 %v1611_v31 }
  0x29   :  { %1482 = vmatpush3.bf16.msra.mxu1 %v1631_v36 }
  0x2a   :  { %1483 = vmatprep.subr.bf16.mxu1 %v1730_v1 }
  0x2b   :  { %466 = vmatpush1.bf16.msra.mxu0 %v1609_v32 }
  0x2c   :  { %467 = vmatprep.subr.bf16.mxu0 %v1615_v33 }
  0x2d   :  { %1484 = vmatpush3.bf16.msra.mxu1 %v1632_v39 }
  0x2e   :  { %1485 = vmatprep.subr.bf16.mxu1 %v1730_v1 }
  0x2f   :  { %468 = vmatpush1.bf16.msra.mxu0 %v1613_v35 }
  0x30   :  { %469 = vmatprep.subr.bf16.mxu0 %v1619_v37 }
  0x31   :  { %1486 = vmatpush3.bf16.msra.mxu1 %v1633_v42 }
  0x32   :  { %1487 = vmatprep.subr.bf16.mxu1 %v1730_v1 }
  0x33   :  { %470 = vmatpush1.bf16.msra.mxu0 %v1617_v38 }
  0x34   :  { %471 = vmatprep.subr.bf16.mxu0 %v1623_v40 }
  0x35   :  { %1488 = vmatpush3.bf16.msra.mxu1 %v1634_v45 }
  0x36   :  { %1489 = vmatprep.subr.bf16.mxu1 %v1730_v1 }
  0x37   :  { %472 = vmatpush1.bf16.msra.mxu0 %v1621_v41  ;;  %v86_v41 = vsub.s32 2, %v2046_v21  ;;  %v1405_v21 = vld [vmem:[%s2217_s7] ss:$0 sm:$0xff] }
  0x38   :  { %473 = vmatprep.subr.bf16.mxu0 %v1626_v43  ;;  %v1287_v43 = vld [vmem:[%s2214_s5] ss:$0 sm:$0xff] }
  0x39   :  { %1490 = vmatpush3.bf16.msra.mxu1 %v1635_v49 }
  0x3a   :  { %1491 = vmatprep.subr.bf16.mxu1 %v1730_v1 }
  0x3b   :  { %474 = vmatpush1.bf16.msra.mxu0 %v1624_v44  ;;  %v87_v44 = vrot.slane %v74_v23, %v86_v41  ;;  %v1703_v23 = vld [vmem:[%s2216_s6 + $0x8] sm:$0xff]  }
  0x3c   :  { %475 = vmatprep.subr.bf16.mxu0 %v1630_v46 }
  0x3d   :  { %1492 = vmatpush3.bf16.msra.mxu1 %v1636_v51 }
  0x3e   :  { %1493 = vmatprep.subr.bf16.mxu1 %v1730_v1 }
  0x3f   :  { %476 = vmatpush1.bf16.msra.mxu0 %v1628_v47 }
  0x40   :  { %754 = vmatprep.subr.bf16.mxu0 %v1640_v53 }
  0x41   :  { %1494 = vmatpush3.bf16.msra.mxu1 %v1637_v52 }
  0x42   :  { %494 = vmatmul.mubr.bf16.vlgmr.msra.gmra.mrb[0].mxu0 %v300_v50  ;;  %1499 = vmatprep.subr.bf16.mxu1 %v1730_v1 }
  0x43   :  { %786 = vmatprep.mubr.bf16.mxu0 %v1731_v2  ;;  %755 = vmatpush1.bf16.msra.mxu0 %v1638_v54 }
  0x44   :  { %1496 = vmatmul.mubr.bf16.vlgmr.msra.gmra.mrb[4].mxu1 %v300_v50  ;;  %756 = vmatprep.subr.bf16.mxu0 %v1644_v57 }
  0x45   :  { %1515 = vmatprep.mubr.msk.bf16.mxu1 %vm1732_vm0, %v1730_v1  ;;  %1500 = vmatpush3.bf16.msra.mxu1 %v1641_v55 }
  0x46   :  { %1501 = vmatprep.subr.bf16.mxu1 %v1730_v1 }
  0x47   :  { %757 = vmatpush1.bf16.msra.mxu0 %v1642_v56 }
  0x48   :  { %758 = vmatprep.subr.bf16.mxu0 %v1648_v59  ;;  %v1691_v59 = vld [vmem:[%s2210_s3 + $0xc8] ss:$12 sps:$4 sm:$0xff]  }
  0x49   :  { %1502 = vmatpush3.bf16.msra.mxu1 %v1645_v58  ;;  %v1670_v58 = vld [vmem:[%s2210_s3 + $0xc0] ss:$12 sps:$4 sm:$0xff]  }
  0x4a   :  { %1503 = vmatprep.subr.bf16.mxu1 %v1730_v1 }
  0x4b   :  { %759 = vmatpush1.bf16.msra.mxu0 %v1646_v60 }
  0x4c   :  { %760 = vmatprep.subr.bf16.mxu0 %v1652_v62  ;;  %v1695_v62 = vld [vmem:[%s2210_s3 + $0xe0] ss:$12 sps:$4 sm:$0xff]  }
  0x4d   :  { %1504 = vmatpush3.bf16.msra.mxu1 %v1649_v61  ;;  %v1675_v61 = vld [vmem:[%s2210_s3 + $0xdc] ss:$12 sps:$4 sm:$0xff]  }
  0x4e   :  { %1505 = vmatprep.subr.bf16.mxu1 %v1730_v1 }
  0x4f   :  { %761 = vmatpush1.bf16.msra.mxu0 %v1650_v63  ;;  %v1678_v63 = vld [vmem:[%s2210_s3 + $0xf4] ss:$12 sps:$4 sm:$0xff]  }
  0x50   :  { %762 = vmatprep.subr.bf16.mxu0 %v1656_v3  ;;  %v1696_v3 = vld [vmem:[%s2210_s3 + $0xf8] ss:$12 sps:$4 sm:$0xff]  }
  0x51   :  { %1506 = vmatpush3.bf16.msra.mxu1 %v1653_v0  ;;  %v1676_v0 = vld [vmem:[%s2210_s3 + $0xf0] ss:$12 sps:$4 sm:$0xff]  }
  0x52   :  { %1507 = vmatprep.subr.bf16.mxu1 %v1730_v1 }
  0x53   :  { %763 = vmatpush1.bf16.msra.mxu0 %v1654_v4  ;;  %v1681_v4 = vld [vmem:[%s2210_s3 + $0x10c] ss:$12 sps:$4 sm:$0xff]  }
  0x54   :  { %764 = vmatprep.subr.bf16.mxu0 %v1660_v6  ;;  %v1684_v6 = vld [vmem:[%s2210_s3 + $0x124] ss:$12 sps:$4 sm:$0xff]  }
  0x55   :  { %1508 = vmatpush3.bf16.msra.mxu1 %v1657_v5  ;;  %v1697_v5 = vld [vmem:[%s2210_s3 + $0x110] ss:$12 sps:$4 sm:$0xff]  }
  0x56   :  { %1509 = vmatprep.subr.bf16.mxu1 %v1730_v1 }
  0x57   :  { %765 = vmatpush1.bf16.msra.mxu0 %v1658_v7  ;;  %v1682_v7 = vld [vmem:[%s2210_s3 + $0x120] ss:$12 sps:$4 sm:$0xff]  }
  0x58   :  { %766 = vmatprep.subr.bf16.mxu0 %v1664_v9  ;;  %v1687_v9 = vld [vmem:[%s2210_s3 + $0x13c] ss:$12 sps:$4 sm:$0xff]  }
  0x59   :  { %1510 = vmatpush3.bf16.msra.mxu1 %v1661_v8  ;;  %v1698_v8 = vld [vmem:[%s2210_s3 + $0x128] ss:$12 sps:$4 sm:$0xff]  }
  0x5a   :  { %1511 = vmatprep.subr.bf16.mxu1 %v1730_v1 }
  0x5b   :  { %767 = vmatpush1.bf16.msra.mxu0 %v1662_v10  ;;  %v1685_v10 = vld [vmem:[%s2210_s3 + $0x138] ss:$12 sps:$4 sm:$0xff]  }
  0x5c   :  { %768 = vmatprep.subr.bf16.mxu0 %v1668_v12  ;;  %v1690_v12 = vld [vmem:[%s2210_s3 + $0x154] ss:$12 sps:$4 sm:$0xff]  }
  0x5d   :  { %1512 = vmatpush3.bf16.msra.mxu1 %v1665_v11  ;;  %v1699_v11 = vld [vmem:[%s2210_s3 + $0x140] ss:$12 sps:$4 sm:$0xff]  }
  0x5e   :  { %1513 = vmatprep.subr.bf16.mxu1 %v1730_v1 }
  0x5f   :  { %769 = vmatpush1.bf16.msra.mxu0 %v1666_v13  ;;  %v1688_v13 = vld [vmem:[%s2210_s3 + $0x150] ss:$12 sps:$4 sm:$0xff]  }
  0x60   :  { %997 = vmatprep.subr.bf16.mxu0 %v1672_v15  ;;  %v1694_v15 = vld [vmem:[%s2210_s3 + $0x16c] ss:$12 sps:$4 sm:$0xff]  }
  0x61   :  { %1514 = vmatpush3.bf16.msra.mxu1 %v1669_v14  ;;  %v1700_v14 = vld [vmem:[%s2210_s3 + $0x158] ss:$12 sps:$4 sm:$0xff]  }
  0x62   :  { %1519 = vmatprep.subr.bf16.mxu1 %v1730_v1 }
  0xf7   :  { %v294_v16 = vpop.f32.mrb[0].mxu1 }
  0xf8   :  { %v1477_v17 = vpop.f32.mrb[1].mxu1  ;;  %v295_v49 = vadd.f32 %v294_v16, %v87_v44  ;;  %v1692_v16 = vld [vmem:[%s2210_s3 + $0x168] ss:$12 sps:$4 sm:$0xff]  }
  0xf9   :  { %v297_v18 = vpop.f32.mrb[2].mxu1  ;;  %v2145_v17 = vld [vmem:[%s2212_s1 + $0x8] sm:$0xff] }
  0xfa   :  { %v1478_v19 = vpop.f32.mrb[3].mxu1  ;;  %v1701_v18 = vld [vmem:[%s2210_s3 + $0x170] ss:$12 sps:$4 sm:$0xff]  }
  0xfb   :  { %v835_v19 = vpack.c.bf16 %v2145_v17, %v2145_v17 }
 0x115   :  { %v495_v26 = vpop.f32.mrb[0].mxu0 }
 0x116   :  { %v1559_v28 = vadd.f32 %v495_v26, %v79_v25  ;;  %v497_v29 = vpop.f32.mrb[1].mxu0  ;;  %v1704_v25 = vld [vmem:[%s2216_s6 + $0x10] sm:$0xff]   ;;  %v1705_v26 = vld [vmem:[%s2216_s6 + $0x18] sm:$0xff]  }
 0x117   :  { %v499_v30 = vpop.f32.mrb[2].mxu0  ;;  %v1560_v33 = vadd.f32 %v497_v29, %v83_v27  ;;  %v536_v35 = vpop.f32.mrb[4].mxu1  ;;  %v1706_v27 = vld [vmem:[%s2216_s6 + $0x20] sm:$0xff]   ;;  %v1708_v29 = vld [vmem:[%s2216_s6 + $0x30] sm:$0xff]  }
 0x118   :  { %v1285_v31 = vmul.f32 -1.442695, %v1559_v28  ;;  %v500_v32 = vpop.f32.mrb[3].mxu0  ;;  %v1497_v36 = vpop.f32.mrb[5].mxu1  ;;  %v563_v46 = vadd.f32 %v1287_v43, %v536_v35  ;;  %v1707_v28 = vld [vmem:[%s2216_s6 + $0x28] sm:$0xff]   ;;  %v1709_v30 = vld [vmem:[%s2216_s6 + $0x38] sm:$0xff]  }
 0x119   :  { %v1286_v34 = vmul.f32 -1.442695, %v1560_v33  ;;  %v539_v37 = vpop.f32.mrb[6].mxu1  ;;  %v1320_v35 = vld [vmem:[%s2213_s4 + $0x3] sm:$0x7] }
 0x11a   :  { %1710 = vpow2.f32 %v1285_v31  ;;  %v1498_v38 = vpop.f32.mrb[7].mxu1  ;;  %v614_v36 = vrot.slane %v1320_v35, %v78_v22 }
 0x11b   :  { %1712 = vpow2.f32 %v1286_v34  ;;  %v618_v38 = vrot.slane %v1320_v35, %v82_v24  ;;  %v1404_v24 = vld [vmem:[%s2214_s5 + $0x1] ss:$0 sm:$0xff] }
 0x124   :  { %v1711_v39 = vpop.eup %1710 }
 0x125   :  { %v546_v40 = vadd.f32 1.0, %v1711_v39  ;;  %v1713_v42 = vpop.eup %1712 }
 0x126   :  { %v553_v45 = vadd.f32 1.0, %v1713_v42 }
 0x127   :  { %1714 = vrcp.f32 %v546_v40 }
 0x128   :  { %1716 = vrcp.f32 %v553_v45 }
 0x131   :  { %v1715_v47 = vpop.eup %1714 }
 0x132   :  { %v564_v50 = vmul.f32 %v1715_v47, %v563_v46  ;;  %v1717_v52 = vpop.eup %1716 }
 0x133   :  { %v567_v53 = vsub.f32 1.0, %v1717_v52  ;;  %v569_v56 = vmul.f32 %v1717_v52, %v1943_v48  ;;  %v1673_v48 = vld [vmem:[%s2210_s3 + $0xd8] ss:$12 sps:$4 sm:$0xff]  }
 0x134   :  { %v565_v51 = vadd.f32 %v564_v50, %v295_v49 }
 0x136   :  { %1718 = vtanh.f32 %v565_v51 }
 0x140   :  { %v1719_v54 = vpop.eup %1718 }
 0x141   :  { %v568_v55 = vmul.f32 %v1719_v54, %v567_v53  ;;  %v622_v53 = vrot.slane %v1320_v35, %v86_v41 }
 0x143   :  { %v570_v57 = vadd.f32 %v569_v56, %v568_v55 }
 0x145   :  { %v572_v60 = vpack.c.bf16 %v570_v57, %v570_v57  ;;  %1227 = vst [vmem:[%s2215_s9] sm:$0xff] %v570_v57 }
 0x147   :  { %787 = vmatmul.mubr.bf16.vlgmr.msra.gmra.mrb[4].mxu0 %v572_v60  ;;  %1516 = vmatmul.mubr.bf16.vlgmr.msra.gmra.mrb[8].mxu1 %v572_v60 }
 0x148   :  { %998 = vmatpush1.bf16.msra.mxu0 %v1670_v58  ;;  %1520 = vmatpush3.bf16.msra.mxu1 %v1691_v59 }
 0x149   :  { %999 = vmatprep.subr.bf16.mxu0 %v1675_v61  ;;  %1521 = vmatprep.subr.bf16.mxu1 %v1730_v1 }
 0x14a   :  { %1029 = vmatprep.mubr.bf16.mxu0 %v1731_v2  ;;  %1535 = vmatprep.mubr.msk.bf16.mxu1 %vm1732_vm0, %v1730_v1  ;;  %v1679_v2 = vld [vmem:[%s2210_s3 + $0x108] ss:$12 sps:$4 sm:$0xff]  }
 0x14c   :  { %1000 = vmatpush1.bf16.msra.mxu0 %v1673_v48  ;;  %1522 = vmatpush3.bf16.msra.mxu1 %v1695_v62 }
 0x14d   :  { %1001 = vmatprep.subr.bf16.mxu0 %v1678_v63  ;;  %1523 = vmatprep.subr.bf16.mxu1 %v1730_v1 }
 0x150   :  { %1002 = vmatpush1.bf16.msra.mxu0 %v1676_v0  ;;  %1524 = vmatpush3.bf16.msra.mxu1 %v1696_v3 }
 0x151   :  { %1003 = vmatprep.subr.bf16.mxu0 %v1681_v4  ;;  %1525 = vmatprep.subr.bf16.mxu1 %v1730_v1 }
 0x154   :  { %1004 = vmatpush1.bf16.msra.mxu0 %v1679_v2  ;;  %1526 = vmatpush3.bf16.msra.mxu1 %v1697_v5 }
 0x155   :  { %1005 = vmatprep.subr.bf16.mxu0 %v1684_v6  ;;  %1527 = vmatprep.subr.bf16.mxu1 %v1730_v1 }
 0x158   :  { %1006 = vmatpush1.bf16.msra.mxu0 %v1682_v7  ;;  %1528 = vmatpush3.bf16.msra.mxu1 %v1698_v8 }
 0x159   :  { %1007 = vmatprep.subr.bf16.mxu0 %v1687_v9  ;;  %1529 = vmatprep.subr.bf16.mxu1 %v1730_v1 }
 0x15c   :  { %1008 = vmatpush1.bf16.msra.mxu0 %v1685_v10  ;;  %1530 = vmatpush3.bf16.msra.mxu1 %v1699_v11 }
 0x15d   :  { %1009 = vmatprep.subr.bf16.mxu0 %v1690_v12  ;;  %1531 = vmatprep.subr.bf16.mxu1 %v1730_v1 }
 0x160   :  { %1010 = vmatpush1.bf16.msra.mxu0 %v1688_v13  ;;  %1532 = vmatpush3.bf16.msra.mxu1 %v1700_v14 }
 0x161   :  { %1011 = vmatprep.subr.bf16.mxu0 %v1694_v15  ;;  %1533 = vmatprep.subr.bf16.mxu1 %v1730_v1 }
 0x164   :  { %1012 = vmatpush1.bf16.msra.mxu0 %v1692_v16  ;;  %1534 = vmatpush3.bf16.msra.mxu1 %v1701_v18 }
 0x165   :  { %1539 = vmatprep.subr.bf16.mxu0 %v1730_v1 }
 0x167   :  { %1030 = vmatmul.mubr.bf16.vlgmr.msra.gmra.mrb[4].mxu0 %v835_v19  ;;  %1536 = vmatmul.mubr.bf16.vlgmr.msra.gmra.mrb[12].mxu1 %v835_v19 }
 0x168   :  { %1555 = vmatprep.mubr.msk.bf16.mxu0 %vm1732_vm0, %v1730_v1  ;;  %1540 = vmatpush3.bf16.msra.mxu0 %v1702_v20 }
 0x169   :  { %1541 = vmatprep.subr.bf16.mxu0 %v1730_v1 }
 0x16c   :  { %1542 = vmatpush3.bf16.msra.mxu0 %v1703_v23 }
 0x16d   :  { %1543 = vmatprep.subr.bf16.mxu0 %v1730_v1 }
 0x170   :  { %1544 = vmatpush3.bf16.msra.mxu0 %v1704_v25 }
 0x171   :  { %1545 = vmatprep.subr.bf16.mxu0 %v1730_v1 }
 0x174   :  { %1546 = vmatpush3.bf16.msra.mxu0 %v1705_v26 }
 0x175   :  { %1547 = vmatprep.subr.bf16.mxu0 %v1730_v1 }
 0x178   :  { %1548 = vmatpush3.bf16.msra.mxu0 %v1706_v27 }
 0x179   :  { %1549 = vmatprep.subr.bf16.mxu0 %v1730_v1 }
 0x17c   :  { %1550 = vmatpush3.bf16.msra.mxu0 %v1707_v28 }
 0x17d   :  { %1551 = vmatprep.subr.bf16.mxu0 %v1730_v1 }
 0x180   :  { %1552 = vmatpush3.bf16.msra.mxu0 %v1708_v29 }
 0x181   :  { %1553 = vmatprep.subr.bf16.mxu0 %v1730_v1 }
 0x184   :  { %1554 = vmatpush3.bf16.msra.mxu0 %v1709_v30 }
 0x21a   :  { %v829_v31 = vpop.f32.mrb[8].mxu1 }
 0x21b   :  { %v1517_v32 = vpop.f32.mrb[9].mxu1  ;;  %v830_v57 = vadd.f32 %v829_v31, %v622_v53 }
 0x21c   :  { %v832_v33 = vpop.f32.mrb[10].mxu1 }
 0x21d   :  { %v1518_v34 = vpop.f32.mrb[11].mxu1 }
 0x23a   :  { %v1031_v37 = vpop.f32.mrb[4].mxu0  ;;  %v1072_v39 = vpop.f32.mrb[12].mxu1 }
 0x23b   :  { %v1561_v40 = vadd.f32 %v1031_v37, %v614_v36  ;;  %v1033_v42 = vpop.f32.mrb[5].mxu0  ;;  %v1537_v1 = vpop.f32.mrb[13].mxu1  ;;  %v1100_v55 = vadd.f32 %v1404_v24, %v1072_v39 }
 0x23c   :  { %v1035_v43 = vpop.f32.mrb[6].mxu0  ;;  %v1075_v44 = vpop.f32.mrb[14].mxu1  ;;  %v1562_v49 = vadd.f32 %v1033_v42, %v618_v38 }
 0x23d   :  { %v1401_v45 = vmul.f32 -1.442695, %v1561_v40  ;;  %v1036_v46 = vpop.f32.mrb[7].mxu0  ;;  %v1538_v47 = vpop.f32.mrb[15].mxu1 }
 0x23e   :  { %v1402_v50 = vmul.f32 -1.442695, %v1562_v49 }
 0x23f   :  { %1720 = vpow2.f32 %v1401_v45 }
 0x240   :  { %1722 = vpow2.f32 %v1402_v50 }
 0x249   :  { %v1721_v51 = vpop.eup %1720 }
 0x24a   :  { %v1082_v52 = vadd.f32 1.0, %v1721_v51  ;;  %v1723_v22 = vpop.eup %1722 }
 0x24b   :  { %v1089_v54 = vadd.f32 1.0, %v1723_v22 }
 0x24c   :  { %1724 = vrcp.f32 %v1082_v52 }
 0x24d   :  { %1726 = vrcp.f32 %v1089_v54 }
 0x256   :  { %v1725_v56 = vpop.eup %1724 }
 0x257   :  { %v1101_v58 = vmul.f32 %v1725_v56, %v1100_v55  ;;  %v1727_v60 = vpop.eup %1726 }
 0x258   :  { %v1104_v61 = vsub.f32 1.0, %v1727_v60  ;;  %v1106_v63 = vmul.f32 %v1727_v60, %v2145_v17 }
 0x259   :  { %v1102_v59 = vadd.f32 %v1101_v58, %v830_v57 }
 0x25b   :  { %1728 = vtanh.f32 %v1102_v59 }
 0x265   :  { %v1729_v48 = vpop.eup %1728 }
 0x266   :  { %v1105_v62 = vmul.f32 %v1729_v48, %v1104_v61 }
 0x268   :  { %v1107_v0 = vadd.f32 %v1106_v63, %v1105_v62 }
 0x26a   :  { %v1109_v3 = vpack.c.bf16 %v1107_v0, %v1107_v0  ;;  %1228 = vst [vmem:[%s2215_s9 + $0x8] sm:$0xff] %v1107_v0 }
 0x26c   :  { %1556 = vmatmul.mubr.bf16.vlgmr.msra.gmra.mrb[8].mxu0 %v1109_v3 }
 0x33f   :  { %v1215_v41 = vpop.f32.mrb[8].mxu0 }
 0x340   :  { %v1216_v4 = vadd.f32 %v1405_v21, %v1215_v41  ;;  %v1557_v2 = vpop.f32.mrb[9].mxu0 }
 0x341   :  { %v1218_v5 = vpop.f32.mrb[10].mxu0 }
 0x342   :  { %1221 = vst [vmem:[%s2218_s8] sm:$0xff] %v1216_v4  ;;  %v1558_v6 = vpop.f32.mrb[11].mxu0 }

</bundles_post_ra>
